<compile_context>
chip_gen: v6e
topology: v6e:2x2x1
jax: 0.10.0
libtpu: 0.0.40
codegen_flags: <defaults>
</compile_context>

<pallas_src>
import jax
import jax.numpy as jnp
from jax.experimental import pallas as pl
from jax.experimental.pallas import tpu as pltpu


def _round_up(x: int, m: int) -> int:
    return ((x + m - 1) // m) * m


def _vmem_capacity_bytes() -> int:
    """Physical VMEM of the local chip; conservative 64 MiB (v7x) if unknown."""
    try:
        info = pltpu.get_tpu_info()
        cap = getattr(info, "vmem_capacity_bytes", None)
        if cap:
            return int(cap)
    except Exception:
        pass
    return 64 * 2**20


def _tile_options(full128: int, cap: int):
    """Descending lane-dense (multiple-of-128) tile candidates for an axis whose
    128-padded extent is `full128`.  Prefers one whole-axis tile, then large tiles
    whose extra padding stays modest, always ending with 128."""
    opts = []
    if full128 <= cap:
        opts.append(full128)
    for c in (1024, 512, 256, 128):
        if c <= cap and c < full128:
            extra = _round_up(full128, c) - full128
            if c == 128 or extra <= max(128, full128 // 4):
                opts.append(c)
    if not opts:  # safety net (cap < 128 is never passed)
        opts.append(min(full128, 128))
    return opts


def _vmem_bytes(D, tt, tk, x_isz, out_isz, c_isz):
    """Estimated VMEM footprint of one grid step (double-buffered blocks + scratch)."""
    return (
        2 * D * tt * x_isz            # x blocks (input dtype, k-invariant but 2-deep)
        + 2 * D * tt * out_isz        # output blocks
        + D * tt * 4                  # f32 accumulator scratch
        + D * tt * c_isz              # casted-activation scratch
        + 2 * tk * D * c_isz          # W1 blocks
        + 2 * D * tk * c_isz          # W2 blocks
        + tk * tt * (4 + c_isz)       # h (f32) + its weight-dtype copy
        + 2 * (tk + D) * 4            # b1 / b2 blocks (f32)
    )


def _select_tiles(D, T128, DE128, x_isz, out_isz, c_isz, t_cap, k_cap, budget):
    """Largest (tt, tk) pair (tt prioritized) whose VMEM estimate fits the budget."""
    tt_opts = _tile_options(T128, t_cap)
    tk_opts = _tile_options(DE128, k_cap)
    for tt in tt_opts:
        for tk in tk_opts:
            if _vmem_bytes(D, tt, tk, x_isz, out_isz, c_isz) <= budget:
                return tt, tk
    return tt_opts[-1], tk_opts[-1]


def ffn_kernel(x_ref, w1_ref, b1_ref, w2_ref, b2_ref, o_ref, acc_ref, xc_ref):
    """One (batch b, T-tile t, DE-tile k) grid step.

    x_ref  : (D, tt)   x.dtype        activation columns (T is the lane axis)
    w1_ref : (tk, D)   compute dtype  fc1 weight rows for this DE tile
    b1_ref : (tk, 1)   float32
    w2_ref : (D, tk)   compute dtype  fc2 weight columns for this DE tile
    b2_ref : (D, 1)    float32
    o_ref  : (D, tt)   x.dtype        output columns
    acc_ref: (D, tt)   float32        accumulator over the DE grid axis
    xc_ref : (D, tt)   compute dtype  activation cast, filled once per (b, t) tile
    """
    k = pl.program_id(2)

    @pl.when(k == 0)
    def _init():
        # Cast the k-invariant activation block once, and fold the fc2 bias into
        # the accumulator init (no separate finalize add).
        xc_ref[...] = x_ref[...].astype(xc_ref.dtype)
        acc_ref[...] = jnp.broadcast_to(b2_ref[...], acc_ref.shape)

    # h_k = relu(W1[k_tile, :] @ x + b1[k_tile])                     (tk, tt) f32
    h = jnp.dot(w1_ref[...], xc_ref[...], preferred_element_type=jnp.float32)
    h = jnp.maximum(h + b1_ref[...], 0.0)

    # acc += W2[:, k_tile] @ h_k                                     (D, tt)  f32
    # Intentional: h is truncated to the weight dtype (bf16 when compute_dtype is
    # bf16) so both matmuls take the MXU fast path; accumulation stays float32.
    acc_ref[...] += jnp.dot(w2_ref[...], h.astype(w2_ref.dtype),
                            preferred_element_type=jnp.float32)

    @pl.when(k == pl.num_programs(2) - 1)
    def _finalize():
        # dropout (eval mode) == identity
        o_ref[...] = acc_ref[...].astype(o_ref.dtype)


def feed_forward(x, w1, b1, w2, b2, *, compute_dtype=jnp.bfloat16,
                 t_tile_cap=1024, k_tile_cap=512):
    """Fused FFN, channels-first.

    x : [B, D, T] (what the PyTorch module actually receives before transpose(1, 2))
    w1: [DE, D]  b1: [DE]  w2: [D, DE]  b2: [D]   (native nn.Linear layout)
    Returns [B, D, T] in x.dtype.
    """
    B, D, T = x.shape
    DE = w1.shape[0]
    assert w1.shape == (DE, D) and w2.shape == (D, DE)
    assert b1.shape == (DE,) and b2.shape == (D,)

    cdt = jnp.dtype(compute_dtype)
    xdt = jnp.dtype(x.dtype)
    out_isz = xdt.itemsize

    # --- Chip-aware VMEM budget (v7x: 64 MiB, v5e/v6e: 128 MiB) -----------------
    phys = _vmem_capacity_bytes()
    ceiling = min(int(phys * 0.8), phys - 8 * 2**20)   # scoped-limit clamp
    budget = ceiling - 2 * 2**20                       # headroom for Mosaic scratch

    # --- Tile selection ----------------------------------------------------------
    T128 = _round_up(T, 128)
    DE128 = _round_up(DE, 128)

    # Keep >= 2 (b, t)-tiles so a 2-TC chip (v7x) can shard the "parallel" axes.
    eff_t_cap = t_tile_cap
    if B == 1 and T128 > 128:
        eff_t_cap = min(eff_t_cap, max(128, _round_up(T128 // 2, 128)))

    tt, tk = _select_tiles(D, T128, DE128, xdt.itemsize, out_isz, cdt.itemsize,
                           eff_t_cap, k_tile_cap, budget)
    T_pad = _round_up(T, tt)
    DE_pad = _round_up(DE, tk)

    # --- Operand preparation (no activation cast pass; only pad T if needed) ------
    xp = x
    if T_pad != T:
        xp = jnp.pad(x, ((0, 0), (0, 0), (0, T_pad - T)))

    # Weights are re-streamed per (b, t)-tile, so keep them in the compute dtype in
    # HBM.  (Callers that invoke this repeatedly should pre-cast / jit the caller so
    # XLA hoists this one-time cast+pad.)
    w1p = w1.astype(cdt)
    w2p = w2.astype(cdt)
    b1p = b1.astype(jnp.float32)
    if DE_pad != DE:
        # Zero-padded W1 rows / W2 cols / b1 entries contribute exactly zero.
        w1p = jnp.pad(w1p, ((0, DE_pad - DE), (0, 0)))
        w2p = jnp.pad(w2p, ((0, 0), (0, DE_pad - DE)))
        b1p = jnp.pad(b1p, ((0, DE_pad - DE),))
    b1p = b1p.reshape(DE_pad, 1)
    b2p = b2.astype(jnp.float32).reshape(D, 1)

    grid = (B, T_pad // tt, DE_pad // tk)

    vmem_est = _vmem_bytes(D, tt, tk, xdt.itemsize, out_isz, cdt.itemsize)
    cp_kwargs = dict(dimension_semantics=("parallel", "parallel", "arbitrary"))
    if vmem_est > 12 * 2**20:
        cp_kwargs["vmem_limit_bytes"] = int(
            min(ceiling, max(vmem_est * 5 // 4, 32 * 2**20)))

    cost = pl.CostEstimate(
        flops=4 * B * T_pad * D * DE_pad,                 # two matmuls
        transcendentals=0,
        bytes_accessed=int(
            B * D * T_pad * xdt.itemsize                  # activations in
            + B * D * T_pad * out_isz                     # activations out
            + B * (T_pad // tt) * (w1p.size + w2p.size) * cdt.itemsize),  # weights
    )

    out = pl.pallas_call(
        ffn_kernel,
        out_shape=jax.ShapeDtypeStruct((B, D, T_pad), x.dtype),
        grid_spec=pltpu.PrefetchScalarGridSpec(
            num_scalar_prefetch=0,
            grid=grid,
            in_specs=[
                pl.BlockSpec((None, D, tt), lambda b, t, k: (b, 0, t)),  # x (k-invariant)
                pl.BlockSpec((tk, D), lambda b, t, k: (k, 0)),           # W1 rows
                pl.BlockSpec((tk, 1), lambda b, t, k: (k, 0)),           # b1
                pl.BlockSpec((D, tk), lambda b, t, k: (0, k)),           # W2 cols
                pl.BlockSpec((D, 1), lambda b, t, k: (0, 0)),            # b2
            ],
            out_specs=pl.BlockSpec((None, D, tt), lambda b, t, k: (b, 0, t)),
            scratch_shapes=[
                pltpu.VMEM((D, tt), jnp.float32),   # f32 accumulator
                pltpu.VMEM((D, tt), cdt),           # casted activation block
            ],
        ),
        compiler_params=pltpu.CompilerParams(**cp_kwargs),
        cost_estimate=cost,
    )(xp, w1p, b1p, w2p, b2p)

    if T_pad != T:
        # Padded T columns carry relu(b1) garbage through fc2 — always slice.
        out = out[:, :, :T]
    return out


def init_params(key, hidden_dim, expansion_factor):
    """nn.Linear-style U(-1/sqrt(fan_in), 1/sqrt(fan_in)) init, PyTorch layout:
    W1: [DE, D], b1: [DE], W2: [D, DE], b2: [D]."""
    D = hidden_dim
    DE = hidden_dim * expansion_factor
    k1, k2, k3, k4 = jax.random.split(key, 4)
    bound1 = 1.0 / jnp.sqrt(D)
    bound2 = 1.0 / jnp.sqrt(DE)
    w1 = jax.random.uniform(k1, (DE, D), jnp.float32, -bound1, bound1)
    b1 = jax.random.uniform(k2, (DE,), jnp.float32, -bound1, bound1)
    w2 = jax.random.uniform(k3, (D, DE), jnp.float32, -bound2, bound2)
    b2 = jax.random.uniform(k4, (D,), jnp.float32, -bound2, bound2)
    return w1, b1, w2, b2


if __name__ == "__main__":
    hidden_dim = 32
    expansion_factor = 4
    B, T = 2, 16

    key = jax.random.PRNGKey(0)
    kx, kp = jax.random.split(key)
    # Input in the module's actual layout: channels-first [B, D, T]
    x = jax.random.normal(kx, (B, hidden_dim, T), jnp.float32)
    w1, b1, w2, b2 = init_params(kp, hidden_dim, expansion_factor)

    # pure-JAX reference (eval-mode dropout == identity):
    #   out[b,:,t] = W2 @ relu(W1 @ x[b,:,t] + b1) + b2
    h_ref = jnp.maximum(jnp.einsum("ed,bdt->bet", w1, x) + b1[None, :, None], 0.0)
    ref = jnp.einsum("de,bet->bdt", w2, h_ref) + b2[None, :, None]

    # exact-precision run (f32 operands) -- strict check
    out_f32 = jax.block_until_ready(
        feed_forward(x, w1, b1, w2, b2, compute_dtype=jnp.float32))
    assert out_f32.shape == (B, hidden_dim, T)
    assert jnp.allclose(out_f32, ref, atol=1e-4, rtol=1e-4)

    # default fast path (bf16 operands, f32 accumulation) -- loose check
    out_bf16 = jax.block_until_ready(feed_forward(x, w1, b1, w2, b2))
    assert out_bf16.shape == (B, hidden_dim, T)
    assert jnp.allclose(out_bf16, ref, atol=5e-2, rtol=5e-2)

    print("KERNEL_OK")
</pallas_src>

<mosaic_0001>
module attributes {stable_mosaic.version = 11 : i64} {
  func.func @ffn_kernel(%arg0: i32, %arg1: i32, %arg2: i32, %arg3: memref<1x32x128xf32, #tpu.memory_space<vmem>>, %arg4: memref<128x32xf32, #tpu.memory_space<vmem>>, %arg5: memref<128x1xf32, #tpu.memory_space<vmem>>, %arg6: memref<32x128xf32, #tpu.memory_space<vmem>>, %arg7: memref<32x1xf32, #tpu.memory_space<vmem>>, %arg8: memref<1x32x128xf32, #tpu.memory_space<vmem>>, %arg9: memref<32x128xf32, #tpu.memory_space<vmem>>, %arg10: memref<32x128xf32, #tpu.memory_space<vmem>>) attributes {dimension_semantics = [#tpu.dimension_semantics<parallel>, #tpu.dimension_semantics<parallel>, #tpu.dimension_semantics<arbitrary>], iteration_bounds = array<i64: 2, 1, 1>, scalar_prefetch = 0 : i64, scratch_operands = 2 : i64, tpu.core_type = #tpu.core_type<tc>, window_params = [{transform_indices = @transform_0, window_bounds = array<i64: 1, 32, 128>}, {transform_indices = @transform_1, window_bounds = array<i64: 128, 32>}, {transform_indices = @transform_2, window_bounds = array<i64: 128, 1>}, {transform_indices = @transform_3, window_bounds = array<i64: 32, 128>}, {pipeline_mode = #tpu.pipeline_mode<synchronous>, transform_indices = @transform_4, window_bounds = array<i64: 32, 1>}, {transform_indices = @transform_5, window_bounds = array<i64: 1, 32, 128>}]} {
    %c0_i32 = arith.constant 0 : i32
    %0 = arith.cmpi eq, %arg2, %c0_i32 : i32
    %1 = arith.extui %0 : i1 to i32
    %c0_i32_0 = arith.constant 0 : i32
    %2 = arith.cmpi ne, %1, %c0_i32_0 : i32
    scf.if %2 {
      %c0_16 = arith.constant 0 : index
      %c0_17 = arith.constant 0 : index
      %c0_18 = arith.constant 0 : index
      %19 = vector.load %arg3[%c0_16, %c0_17, %c0_18] : memref<1x32x128xf32, #tpu.memory_space<vmem>>, vector<1x32x128xf32>
      %20 = vector.shape_cast %19 : vector<1x32x128xf32> to vector<32x128xf32>
      %c0_19 = arith.constant 0 : index
      %c0_20 = arith.constant 0 : index
      %21 = vector.load %arg10[%c0_19, %c0_20] : memref<32x128xf32, #tpu.memory_space<vmem>>, vector<32x128xf32>
      tpu.vector_store %arg10[%c0_19, %c0_20], %20 {strides = array<i32>} : memref<32x128xf32, #tpu.memory_space<vmem>>, vector<32x128xf32>,
      %c0_21 = arith.constant 0 : index
      %c0_22 = arith.constant 0 : index
      %22 = vector.load %arg7[%c0_21, %c0_22] : memref<32x1xf32, #tpu.memory_space<vmem>>, vector<32x1xf32>
      %23 = vector.shape_cast %22 : vector<32x1xf32> to vector<32x1xf32>
      %24 = vector.broadcast %23 : vector<32x1xf32> to vector<32x128xf32>
      %c0_23 = arith.constant 0 : index
      %c0_24 = arith.constant 0 : index
      %25 = vector.load %arg9[%c0_23, %c0_24] : memref<32x128xf32, #tpu.memory_space<vmem>>, vector<32x128xf32>
      tpu.vector_store %arg9[%c0_23, %c0_24], %24 {strides = array<i32>} : memref<32x128xf32, #tpu.memory_space<vmem>>, vector<32x128xf32>,
    } else {
    }
    %c0 = arith.constant 0 : index
    %c0_1 = arith.constant 0 : index
    %3 = vector.load %arg4[%c0, %c0_1] : memref<128x32xf32, #tpu.memory_space<vmem>>, vector<128x32xf32>
    %c0_2 = arith.constant 0 : index
    %c0_3 = arith.constant 0 : index
    %4 = vector.load %arg10[%c0_2, %c0_3] : memref<32x128xf32, #tpu.memory_space<vmem>>, vector<32x128xf32>
    %cst = arith.constant dense<0.000000e+00> : vector<128x128xf32>
    %5 = tpu.matmul %3, %4, %cst {dimension_numbers = #tpu.dot_dimension_numbers<[1], [0], [0], [1], [0, 0, 1, 1], [], []>} : vector<128x32xf32>, vector<32x128xf32>, vector<128x128xf32> -> vector<128x128xf32>
    %c0_4 = arith.constant 0 : index
    %c0_5 = arith.constant 0 : index
    %6 = vector.load %arg5[%c0_4, %c0_5] : memref<128x1xf32, #tpu.memory_space<vmem>>, vector<128x1xf32>
    %7 = vector.broadcast %6 : vector<128x1xf32> to vector<128x128xf32>
    %8 = arith.addf %5, %7 : vector<128x128xf32>
    %cst_6 = arith.constant 0.000000e+00 : f32
    %9 = vector.broadcast %cst_6 : f32 to vector<128x128xf32>
    %10 = arith.maximumf %8, %9 : vector<128x128xf32>
    %c0_7 = arith.constant 0 : index
    %c0_8 = arith.constant 0 : index
    %11 = vector.load %arg9[%c0_7, %c0_8] : memref<32x128xf32, #tpu.memory_space<vmem>>, vector<32x128xf32>
    %c0_9 = arith.constant 0 : index
    %c0_10 = arith.constant 0 : index
    %12 = vector.load %arg6[%c0_9, %c0_10] : memref<32x128xf32, #tpu.memory_space<vmem>>, vector<32x128xf32>
    %cst_11 = arith.constant dense<0.000000e+00> : vector<32x128xf32>
    %13 = tpu.matmul %12, %10, %cst_11 {dimension_numbers = #tpu.dot_dimension_numbers<[1], [0], [0], [1], [0, 0, 1, 1], [], []>} : vector<32x128xf32>, vector<128x128xf32>, vector<32x128xf32> -> vector<32x128xf32>
    %14 = arith.addf %11, %13 : vector<32x128xf32>
    %c0_12 = arith.constant 0 : index
    %c0_13 = arith.constant 0 : index
    %15 = vector.load %arg9[%c0_12, %c0_13] : memref<32x128xf32, #tpu.memory_space<vmem>>, vector<32x128xf32>
    tpu.vector_store %arg9[%c0_12, %c0_13], %14 {strides = array<i32>} : memref<32x128xf32, #tpu.memory_space<vmem>>, vector<32x128xf32>,
    %c0_i32_14 = arith.constant 0 : i32
    %16 = arith.cmpi eq, %arg2, %c0_i32_14 : i32
    %17 = arith.extui %16 : i1 to i32
    %c0_i32_15 = arith.constant 0 : i32
    %18 = arith.cmpi ne, %17, %c0_i32_15 : i32
    scf.if %18 {
      %c0_16 = arith.constant 0 : index
      %c0_17 = arith.constant 0 : index
      %19 = vector.load %arg9[%c0_16, %c0_17] : memref<32x128xf32, #tpu.memory_space<vmem>>, vector<32x128xf32>
      %c0_18 = arith.constant 0 : index
      %c0_19 = arith.constant 0 : index
      %c0_20 = arith.constant 0 : index
      %20 = vector.load %arg8[%c0_18, %c0_19, %c0_20] : memref<1x32x128xf32, #tpu.memory_space<vmem>>, vector<1x32x128xf32>
      %21 = vector.shape_cast %20 : vector<1x32x128xf32> to vector<32x128xf32>
      %22 = vector.shape_cast %19 : vector<32x128xf32> to vector<1x32x128xf32>
      tpu.vector_store %arg8[%c0_18, %c0_19, %c0_20], %22 {strides = array<i32>} : memref<1x32x128xf32, #tpu.memory_space<vmem>>, vector<1x32x128xf32>,
    } else {
    }
    return
  }
  func.func @transform_0(%arg0: i32, %arg1: i32, %arg2: i32) -> (i32, i32, i32) {
    %c0_i32 = arith.constant 0 : i32
    %c0_i32_0 = arith.constant 0 : i32
    return %arg0, %c0_i32, %arg1 : i32, i32, i32
  }
  func.func @transform_1(%arg0: i32, %arg1: i32, %arg2: i32) -> (i32, i32) {
    %c0_i32 = arith.constant 0 : i32
    %c0_i32_0 = arith.constant 0 : i32
    return %arg2, %c0_i32 : i32, i32
  }
  func.func @transform_2(%arg0: i32, %arg1: i32, %arg2: i32) -> (i32, i32) {
    %c0_i32 = arith.constant 0 : i32
    %c0_i32_0 = arith.constant 0 : i32
    return %arg2, %c0_i32 : i32, i32
  }
  func.func @transform_3(%arg0: i32, %arg1: i32, %arg2: i32) -> (i32, i32) {
    %c0_i32 = arith.constant 0 : i32
    %c0_i32_0 = arith.constant 0 : i32
    return %c0_i32, %arg2 : i32, i32
  }
  func.func @transform_4(%arg0: i32, %arg1: i32, %arg2: i32) -> (i32, i32) {
    %c0_i32 = arith.constant 0 : i32
    %c0_i32_0 = arith.constant 0 : i32
    %c0_i32_1 = arith.constant 0 : i32
    return %c0_i32, %c0_i32_0 : i32, i32
  }
  func.func @transform_5(%arg0: i32, %arg1: i32, %arg2: i32) -> (i32, i32, i32) {
    %c0_i32 = arith.constant 0 : i32
    %c0_i32_0 = arith.constant 0 : i32
    return %arg0, %c0_i32, %arg1 : i32, i32, i32
  }
}

</mosaic_0001>

<bundles_post_ra>
// kernel: tpu_custom_call.1
= control target key start
LH: loop header
LB: loop body
LE: loop exit
PB: predicated region body
PF: predicated region fallthrough
CT: control target
= control target key end

     0   :  { %10 = vsyncpa [#allocation5], 0  ;;  %s1513_s0 = inlined_call_operand.vmem [shape: f32[2,32,128], index: 0, kind: input, shape index: {}]   ;;  %s1514_s1 = inlined_call_operand.vmem [shape: f32[128,32], index: 1, kind: input, shape index: {}]   ;;  %s1515_s2 = inlined_call_operand.vmem [shape: f32[128,1], index: 2, kind: input, shape index: {}]   ;;  %s1516_s3 = inlined_call_operand.vmem [shape: f32[32,128], index: 3, kind: input, shape index: {}]   ;;  %s1517_s4 = inlined_call_operand.vmem [shape: f32[32,1], index: 4, kind: input, shape index: {}]   ;;  %s1518_s5 = inlined_call_operand.hbm [shape: f32[2,32,128], index: 5, kind: output, shape index: {}]  }
   0x1   :  { %12 = vsyncpa [#allocation5 + $0x1], 0  ;;  %s1251_s18 = smov 0   ;;  %s1253_s19 = smov 0  }
   0x2   :  { %s1255_s20 = smov 0   ;;  %s1257_s21 = smov 0  }
   0x3   :  { %s1259_s22 = smov 0   ;;  %s1261_s23 = smov 0  }
   0x4 LB: > { %s935_s24 = sadd.s32 4294967295, %s1215_s23   ;;  %s936_s25 = sadd.s32 4294967294, %s1215_s23   ;;  %s1215_s23 = sphi %s1261_s23, %s18_s23   ;;  %s1211_s22 = sphi %s1259_s22, %s1525_s22   ;;  %s1207_s21 = sphi %s1257_s21, %s1524_s21   ;;  %s1203_s20 = sphi %s1255_s20, %s1523_s20   ;;  %s1199_s19 = sphi %s1253_s19, %s1522_s19   ;;  %s1195_s18 = sphi %s1251_s18, %s1521_s18  }
   0x5   : > { %s37_s26 = sadd.s32 1, %s1211_s22  ;;  %s173_s27 = sadd.s32 1, %s1203_s20 }
   0x6   : > { %p39_p0 = scmp.ge.s32.totalorder %s37_s26, 2  ;;  %p183_p1 = scmp.ne.s32.totalorder %s1203_s20, %s1199_s19 }
   0x7   : > { %p184_p2 = scmp.eq.s32.totalorder %s935_s24, 1  ;;  %p189_p3 = scmp.ne.s32.totalorder %s1199_s19, %s1195_s18 }
   0x8   : > { %s1527_s26 = smov (%p39_p0, %s37_s26), 0  ;;  %p190_p5 = scmp.eq.s32.totalorder %s936_s25, 1 }
   0x9   : > { %p1291_p4 = por %p184_p2, %p183_p1  ;;  %s168_s29 = ssub.s32 %s1211_s22, %s1527_s26 }
   0xa   : > { %p942_p6 = scmp.ge.s32.totalorder %s1215_s23, 1  ;;  %p171_p7 = scmp.eq.s32.totalorder %s168_s29, 0 }
   0xb   : > { %p1298_p8 = por %p190_p5, %p189_p3  ;;  %p247_p9 = scmp.lt.s32.totalorder %s1215_s23, 3 }
   0xc   : > { %s1304_s6 = scalar_select %p171_p7, %s1203_s20, %s173_s27  }
   0xd   : > { %p248_p10 = pnand %p942_p6, %p247_p9 }
   0xe   : > { %p292_p11 = scmp.lt.s32.totalorder (!%p248_p10), %s1207_s21, 1  ;;  %s289_s17 = sand.u32 (!%p248_p10), 1, %s1199_s19  }
   0xf   : > { %251 = sbr.rel (%p248_p10) target bundleno = 505 (0x1f9), region = 40  ;;  %s943_s24 = sshll.u32 (!%p248_p10), %s289_s17, 5 }
  0x10   : > { %s291_s25 = scalar_lea.vmem (!%p248_p10), [#allocation4], %s943_s24  ;;  %s968_s29 = sshll.u32 (!%p248_p10), %s1207_s21, 9 }
  0x11   : > { %s809_s27 = sshll.u32 (!%p248_p10), %s291_s25, 4  ;;  %s1218_s11 = smov (!%p248_p10), [#allocation4]   ;;  %s1461_s27 = int_to_ptr.vmem [resolvable:$true] %s809_s27 }
  0x12   : > { %s1143_s12 = sshll.u32 (!%p248_p10), %s1218_s11, 4  ;;  %s1144_s12 = int_to_ptr.vmem [resolvable:$false] %s1143_s12 }
  0x13   : > { %s1145_s14 = scalar_lea.vmem (!%p248_p10), %s1144_s12, 1024  ;;  %p1146_p1 = scmp.lt.s32.totalorder (!%p248_p10), %s1461_s27, %s1144_s12 }
  0x14   : > { %v356_v0 = vld [vmem:[%s1514_s1] sm:$0xff]  ;;  %vm472_vm0 = vcmask 261120   ;;  %v1217_v1 = vmov 0   ;;  %s293_s9 = scalar_select %p292_p11, %s1207_s21, 1  ;;  %v391_v2 = vld [vmem:[%s1515_s2 + $0x78] sm:$0xff]  ;;  %v389_v3 = vld [vmem:[%s1515_s2 + $0x68] sm:$0xff] }
  0x15   : > { %1017 = vmatprep.mubr.msk.f32.mxu0 %vm472_vm0, %v356_v0  ;;  %1137 = vset.pattern.permute.xlu0 %v1217_v1  ;;  %v390_v6 = vld [vmem:[%s1515_s2 + $0x70] sm:$0xff]  ;;  %v388_v8 = vld [vmem:[%s1515_s2 + $0x60] sm:$0xff]  ;;  %v387_v10 = vld [vmem:[%s1515_s2 + $0x58] sm:$0xff]  ;;  %s1468_s21 = scalar_lea.sflag [#allocation5], %s289_s17 }
  0x16   : > { %1138 = vset.pattern.permute.xlu1 %v1217_v1  ;;  %s967_s10 = sshll.u32 %s293_s9, 5  ;;  %469 = vperm.xlu0 %1137, %v391_v2   ;;  %v357_v11 = vld [vmem:[%s1514_s1 + $0x8] sm:$0xff]  ;;  %v386_v12 = vld [vmem:[%s1515_s2 + $0x50] sm:$0xff]  ;;  %v359_v15 = vld [vmem:[%s1514_s1 + $0x18] sm:$0xff]  ;;  %s1466_s9 = scalar_lea.hbm %s1518_s5, %s968_s29 }
  0x17   : > { %s299_s13 = scalar_lea.vmem %s1513_s0, %s967_s10  ;;  %459 = vperm.xlu1 %1138, %v389_v3   ;;  %v358_v13 = vld [vmem:[%s1514_s1 + $0x10] sm:$0xff]  ;;  %v385_v14 = vld [vmem:[%s1515_s2 + $0x48] sm:$0xff]  ;;  %v384_v16 = vld [vmem:[%s1515_s2 + $0x40] sm:$0xff]  ;;  %s1139_s10 = scalar_lea.vmem %s1461_s27, 512 }
  0x18   : > { %v323_v4 = vld [vmem:[%s299_s13 + $0x18] sm:$0xff]  ;;  %v322_v5 = vld [vmem:[%s299_s13 + $0x10] sm:$0xff]  ;;  %v321_v7 = vld [vmem:[%s299_s13 + $0x8] sm:$0xff]  ;;  %p1140_p12 = scmp.ne.s32.totalorder %s1461_s27, %s1139_s10  ;;  %p1147_p2 = scmp.lt.s32.totalorder %s1145_s14, %s1139_s10 }
  0x19   : > { %1009 = vmatprep.subr.mxu0 %v323_v4  ;;  %v320_v9 = vld [vmem:[%s299_s13] sm:$0xff]  ;;  %v383_v18 = vld [vmem:[%s1515_s2 + $0x38] sm:$0xff]  ;;  %v361_v19 = vld [vmem:[%s1514_s1 + $0x28] sm:$0xff] }
  0x1a   : > { %1010 = vmatpush3.msra.mxu0 %v323_v4  ;;  %464 = vperm.xlu0 %1137, %v390_v6   ;;  %v360_v17 = vld [vmem:[%s1514_s1 + $0x20] sm:$0xff]  ;;  %v382_v20 = vld [vmem:[%s1515_s2 + $0x30] sm:$0xff]  ;;  %v381_v22 = vld [vmem:[%s1515_s2 + $0x28] sm:$0xff]  ;;  %p1141_p13 = pnand %p1140_p12, %p1291_p4  ;;  %p1148_p3 = por %p1147_p2, %p1146_p1 }
  0x1b   : > { %1011 = vmatprep.subr.mxu0 %v322_v5  ;;  %454 = vperm.xlu1 %1138, %v388_v8   ;;  %v362_v21 = vld [vmem:[%s1514_s1 + $0x30] sm:$0xff]  ;;  %v363_v23 = vld [vmem:[%s1514_s1 + $0x38] sm:$0xff]  ;;  %v380_v24 = vld [vmem:[%s1515_s2 + $0x20] sm:$0xff] }
  0x1c   : > { %1012 = vmatpush3.msra.mxu0 %v322_v5  ;;  %v364_v25 = vld [vmem:[%s1514_s1 + $0x40] sm:$0xff]  ;;  %v379_v26 = vld [vmem:[%s1515_s2 + $0x18] sm:$0xff]  ;;  %v365_v27 = vld [vmem:[%s1514_s1 + $0x48] sm:$0xff]  ;;  %p1142_p0 = pneg %p1141_p13 }
  0x1d   : > { %1013 = vmatprep.subr.mxu0 %v321_v7  ;;  %v378_v28 = vld [vmem:[%s1515_s2 + $0x10] sm:$0xff]  ;;  %v377_v30 = vld [vmem:[%s1515_s2 + $0x8] sm:$0xff]  ;;  %v367_v31 = vld [vmem:[%s1514_s1 + $0x58] sm:$0xff] }
  0x1e   : > { %1014 = vmatpush3.msra.mxu0 %v321_v7  ;;  %449 = vperm.xlu0 %1137, %v387_v10   ;;  %v366_v29 = vld [vmem:[%s1514_s1 + $0x50] sm:$0xff]  ;;  %v376_v32 = vld [vmem:[%s1515_s2] sm:$0xff]  ;;  %v369_v35 = vld [vmem:[%s1514_s1 + $0x68] sm:$0xff]  ;;  %p1149_p5 = pnand %p1148_p3, %p1142_p0 }
  0x1f   : > { %1015 = vmatprep.subr.mxu0 %v320_v9  ;;  %444 = vperm.xlu1 %1138, %v386_v12   ;;  %v368_v33 = vld [vmem:[%s1514_s1 + $0x60] sm:$0xff]  ;;  %v329_v36 = vld [vmem:[%s1517_s4 + $0x8] sm:$0xff]  ;;  %v370_v37 = vld [vmem:[%s1514_s1 + $0x70] sm:$0xff] }
  0x20   : > { %1016 = vmatpush3.msra.mxu0 %v320_v9  ;;  %v328_v34 = vld [vmem:[%s1517_s4] sm:$0xff]  ;;  %v330_v38 = vld [vmem:[%s1517_s4 + $0x10] sm:$0xff]  ;;  %v371_v39 = vld [vmem:[%s1514_s1 + $0x78] sm:$0xff] }
  0x21   : > { %1018 = vmatmul.mubr.msk.f32.vlgmr.msra.gmra.mxu0 %vm472_vm0, %v357_v11  ;;  %v331_v40 = vld [vmem:[%s1517_s4 + $0x18] sm:$0xff]  ;;  %v686_v41 = vld [vmem:[%s1516_s3] sm:$0xff] }
  0x22   : > { %1020 = vmatprep.mubr.msk.f32.mxu0 %vm472_vm0, %v358_v13  ;;  %439 = vperm.xlu0 %1137, %v385_v14  }
  0x23   : > { %434 = vperm.xlu1 %1138, %v384_v16   ;;  %1073 = vmatprep.mubr.f32.mxu1 %v686_v41 }
  0x25   : > { %1021 = vmatmul.mubr.msk.f32.gmra.mxu0 %vm472_vm0, %v359_v15 }
  0x26   : > { %1023 = vmatprep.mubr.msk.f32.mxu0 %vm472_vm0, %v360_v17  ;;  %429 = vperm.xlu0 %1137, %v383_v18  }
  0x27   : > { %424 = vperm.xlu1 %1138, %v382_v20  }
  0x29   : > { %1024 = vmatmul.mubr.msk.f32.gmra.mxu0 %vm472_vm0, %v361_v19 }
  0x2a   : > { %1026 = vmatprep.mubr.msk.f32.mxu0 %vm472_vm0, %v362_v21  ;;  %419 = vperm.xlu0 %1137, %v381_v22  }
  0x2b   : > { %414 = vperm.xlu1 %1138, %v380_v24  }
  0x2d   : > { %1027 = vmatmul.mubr.msk.f32.gmra.mxu0 %vm472_vm0, %v363_v23 }
  0x2e   : > { %1029 = vmatprep.mubr.msk.f32.mxu0 %vm472_vm0, %v364_v25  ;;  %409 = vperm.xlu0 %1137, %v379_v26  }
  0x2f   : > { %404 = vperm.xlu1 %1138, %v378_v28  }
  0x31   : > { %1030 = vmatmul.mubr.msk.f32.gmra.mxu0 %vm472_vm0, %v365_v27 }
  0x32   : > { %1032 = vmatprep.mubr.msk.f32.mxu0 %vm472_vm0, %v366_v29  ;;  %399 = vperm.xlu0 %1137, %v377_v30  }
  0x33   : > { %394 = vperm.xlu1 %1138, %v376_v32  }
  0x35   : > { %1033 = vmatmul.mubr.msk.f32.gmra.mxu0 %vm472_vm0, %v367_v31 }
  0x36   : > { %1035 = vmatprep.mubr.msk.f32.mxu0 %vm472_vm0, %v368_v33  ;;  %334 = vperm.xlu0 %1137, %v328_v34  }
  0x37   : > { %339 = vperm.xlu1 %1138, %v329_v36  }
  0x39   : > { %1036 = vmatmul.mubr.msk.f32.gmra.mxu0 %vm472_vm0, %v369_v35 }
  0x3a   : > { %1038 = vmatprep.mubr.msk.f32.mxu0 %vm472_vm0, %v370_v37  ;;  %344 = vperm.xlu0 %1137, %v330_v38  }
  0x3b   : > { %349 = vperm.xlu1 %1138, %v331_v40  }
  0x3d   : > { %1039 = vmatmul.mubr.msk.f32.gmra.mxu0 %vm472_vm0, %v371_v39 }
  0x91   : > { %v470_v47 = vpop.permute.xlu0 %469 }
  0x92   : > { %v460_v49 = vpop.permute.xlu1 %459 }
  0x95   : > { %v465_v52 = vpop.permute.xlu0 %464 }
  0x96   : > { %v455_v54 = vpop.permute.xlu1 %454 }
  0x99   : > { %v450_v57 = vpop.permute.xlu0 %449 }
  0x9a   : > { %v445_v59 = vpop.permute.xlu1 %444 }
  0x9d   : > { %v440_v62 = vpop.permute.xlu0 %439 }
  0x9e   : > { %v435_v1 = vpop.permute.xlu1 %434 }
  0xa1   : > { %v430_v8 = vpop.permute.xlu0 %429 }
  0xa2   : > { %v425_v11 = vpop.permute.xlu1 %424 }
  0xa5   : > { %v420_v16 = vpop.permute.xlu0 %419 }
  0xa6   : > { %v415_v19 = vpop.permute.xlu1 %414 }
  0xa9   : > { %v410_v24 = vpop.permute.xlu0 %409 }
  0xaa   : > { %v405_v27 = vpop.permute.xlu1 %404 }
  0xad   : > { %v400_v32 = vpop.permute.xlu0 %399 }
  0xae   : > { %v395_v35 = vpop.permute.xlu1 %394 }
  0xe1   : > { %v1438_v42 = vpop.f32.mrf.mxu0 }
  0xe2   : > { %v593_v36 = vadd.f32 %v1438_v42, %v400_v32  ;;  %v688_v42 = vld [vmem:[%s1516_s3 + $0x10] sm:$0xff] }
  0xe3   : > { %v1440_v43 = vpop.f32.mrf.mxu0 }
  0xe4   : > { %v588_v38 = vadd.f32 %v1440_v43, %v395_v35  ;;  %v667_v40 = vmax.f32 %v593_v36, 0.0  ;;  %v689_v43 = vld [vmem:[%s1516_s3 + $0x18] sm:$0xff] }
  0xe5   : > { %v1442_v44 = vpop.f32.mrf.mxu0 }
  0xe6   : > { %v603_v30 = vadd.f32 %v1442_v44, %v410_v24  ;;  %v666_v41 = vmax.f32 %v588_v38, 0.0  ;;  %v687_v44 = vld [vmem:[%s1516_s3 + $0x8] sm:$0xff] }
  0xe7   : > { %v1444_v45 = vpop.f32.mrf.mxu0 }
  0xe8   : > { %v598_v33 = vadd.f32 %v1444_v45, %v405_v27  ;;  %v669_v37 = vmax.f32 %v603_v30, 0.0  ;;  %v340_v45 = vpop.permute.xlu1 %339 }
  0xe9   : > { %v1025_v46 = vpop.f32.mrf.mxu0 }
  0xea   : > { %v613_v25 = vadd.f32 %v1025_v46, %v420_v16  ;;  %v668_v39 = vmax.f32 %v598_v33, 0.0  ;;  %v335_v46 = vpop.permute.xlu0 %334 }
  0xeb   : > { %v607_v48 = vpop.f32.mrf.mxu0 }
  0xec   : > { %v608_v28 = vadd.f32 %v607_v48, %v415_v19  ;;  %v671_v31 = vmax.f32 %v613_v25, 0.0 }
  0xed   : > { %v1028_v50 = vpop.f32.mrf.mxu0 }
  0xee   : > { %v623_v20 = vadd.f32 %v1028_v50, %v430_v8  ;;  %v670_v34 = vmax.f32 %v608_v28, 0.0 }
  0xef   : > { %v617_v51 = vpop.f32.mrf.mxu0 }
  0xf0   : > { %v618_v22 = vadd.f32 %v617_v51, %v425_v11  ;;  %v673_v26 = vmax.f32 %v623_v20, 0.0  ;;  %v350_v51 = vpop.permute.xlu1 %349 }
  0xf1   : > { %v1031_v53 = vpop.f32.mrf.mxu0 }
  0xf2   : > { %v633_v14 = vadd.f32 %v1031_v53, %v440_v62  ;;  %v672_v29 = vmax.f32 %v618_v22, 0.0 }
  0xf3   : > { %v627_v55 = vpop.f32.mrf.mxu0 }
  0xf4   : > { %v628_v17 = vadd.f32 %v627_v55, %v435_v1  ;;  %v675_v21 = vmax.f32 %v633_v14, 0.0 }
  0xf5   : > { %v1034_v56 = vpop.f32.mrf.mxu0 }
  0xf6   : > { %v643_v9 = vadd.f32 %v1034_v56, %v450_v57  ;;  %v674_v23 = vmax.f32 %v628_v17, 0.0 }
  0xf7   : > { %v637_v58 = vpop.f32.mrf.mxu0 }
  0xf8   : > { %v638_v12 = vadd.f32 %v637_v58, %v445_v59  ;;  %v677_v15 = vmax.f32 %v643_v9, 0.0 }
  0xf9   : > { %v1037_v60 = vpop.f32.mrf.mxu0 }
  0xfa   : > { %v653_v3 = vadd.f32 %v1037_v60, %v460_v49  ;;  %v676_v18 = vmax.f32 %v638_v12, 0.0 }
  0xfb   : > { %v647_v61 = vpop.f32.mrf.mxu0 }
  0xfc   : > { %v648_v6 = vadd.f32 %v647_v61, %v455_v54  ;;  %v679_v10 = vmax.f32 %v653_v3, 0.0  ;;  %v345_v54 = vpop.permute.xlu0 %344 }
  0xfd   : > { %v1040_v63 = vpop.f32.mrf.mxu0 }
  0xfe   : > { %v663_v0 = vadd.f32 %v1040_v63, %v470_v47  ;;  %v678_v13 = vmax.f32 %v648_v6, 0.0 }
  0xff   : > { %v657_v2 = vpop.f32.mrf.mxu0 }
 0x100   : > { %v681_v4 = vmax.f32 %v663_v0, 0.0  ;;  %v658_v5 = vadd.f32 %v657_v2, %v465_v52 }
 0x102   : > { %v680_v7 = vmax.f32 %v658_v5, 0.0  ;;  %1041 = vmatprep.subr.mxu1 %v681_v4 }
 0x103   : > { %1042 = vmatpush3.msra.mxu1 %v681_v4 }
 0x104   : > { %1043 = vmatprep.subr.mxu1 %v680_v7 }
 0x105   : > { %1044 = vmatpush3.msra.mxu1 %v680_v7 }
 0x106   : > { %1045 = vmatprep.subr.mxu1 %v679_v10 }
 0x107   : > { %1046 = vmatpush3.msra.mxu1 %v679_v10 }
 0x108   : > { %1047 = vmatprep.subr.mxu1 %v678_v13 }
 0x109   : > { %1048 = vmatpush3.msra.mxu1 %v678_v13 }
 0x10a   : > { %1049 = vmatprep.subr.mxu1 %v677_v15 }
 0x10b   : > { %1050 = vmatpush3.msra.mxu1 %v677_v15 }
 0x10c   : > { %1051 = vmatprep.subr.mxu1 %v676_v18 }
 0x10d   : > { %1052 = vmatpush3.msra.mxu1 %v676_v18 }
 0x10e   : > { %1053 = vmatprep.subr.mxu1 %v675_v21 }
 0x10f   : > { %1054 = vmatpush3.msra.mxu1 %v675_v21 }
 0x110   : > { %1055 = vmatprep.subr.mxu1 %v674_v23 }
 0x111   : > { %1056 = vmatpush3.msra.mxu1 %v674_v23 }
 0x112   : > { %1057 = vmatprep.subr.mxu1 %v673_v26 }
 0x113   : > { %1058 = vmatpush3.msra.mxu1 %v673_v26 }
 0x114   : > { %1059 = vmatprep.subr.mxu1 %v672_v29 }
 0x115   : > { %1060 = vmatpush3.msra.mxu1 %v672_v29 }
 0x116   : > { %1061 = vmatprep.subr.mxu1 %v671_v31 }
 0x117   : > { %1062 = vmatpush3.msra.mxu1 %v671_v31 }
 0x118   : > { %1063 = vmatprep.subr.mxu1 %v670_v34 }
 0x119   : > { %1064 = vmatpush3.msra.mxu1 %v670_v34 }
 0x11a   : > { %1065 = vmatprep.subr.mxu1 %v669_v37 }
 0x11b   : > { %1066 = vmatpush3.msra.mxu1 %v669_v37 }
 0x11c   : > { %1067 = vmatprep.subr.mxu1 %v668_v39 }
 0x11d   : > { %1068 = vmatpush3.msra.mxu1 %v668_v39 }
 0x11e   : > { %1069 = vmatprep.subr.mxu1 %v667_v40 }
 0x11f   : > { %1070 = vmatpush3.msra.mxu1 %v667_v40 }
 0x120   : > { %1071 = vmatprep.subr.mxu1 %v666_v41 }
 0x121   : > { %1072 = vmatpush3.msra.mxu1 %v666_v41 }
 0x122   : > { %1074 = vmatmul.mubr.f32.vlgmr.msra.gmra.mxu1 %v687_v44 }
 0x123   : > { %1076 = vmatprep.mubr.f32.mxu1 %v688_v42 }
 0x126   : > { %1077 = vmatmul.mubr.f32.gmra.mxu1 %v689_v43 }
 0x1e2   : > { %v1075_v47 = vpop.f32.mrf.mxu1 }
 0x1e3   : > { %v776_v48 = vadd.f32 %v1075_v47, %v340_v45 }
 0x1e4   : > { %v756_v49 = vpop.f32.mrf.mxu1 }
 0x1e5   : > { %791 = vst [vmem:[%s291_s25 + $0x8] sm:$0xff] %v776_v48  ;;  %v775_v50 = vadd.f32 %v756_v49, %v335_v46 }
 0x1e6   : > { %v1078_v52 = vpop.f32.mrf.mxu1 }
 0x1e7   : > { %790 = vst [vmem:[%s291_s25] sm:$0xff] %v775_v50  ;;  %v778_v53 = vadd.f32 %v1078_v52, %v350_v51 }
 0x1e8   : > { %v766_v55 = vpop.f32.mrf.mxu1 }
 0x1e9   : > { %793 = vst [vmem:[%s291_s25 + $0x18] sm:$0xff] %v778_v53  ;;  %v777_v56 = vadd.f32 %v766_v55, %v345_v54 }
 0x1eb   : > { %792 = vst [vmem:[%s291_s25 + $0x10] sm:$0xff] %v777_v56 }
 0x1ec   : > { %1152 = shalt.err (!%p1149_p5)
}
 0x1ed   : > { %s1153_s15 = scalar_lea.hbm %s1466_s9, 512  ;;  %s1157_s17 = scalar_lea.hbm %s1518_s5, 1024 }
 0x1ee   : > { %p1154_p6 = scmp.ne.s32.totalorder %s1466_s9, %s1153_s15  ;;  %p1158_p10 = scmp.lt.s32.totalorder %s1466_s9, %s1518_s5 }
 0x1ef   : > { %p1159_p11 = scmp.lt.s32.totalorder %s1157_s17, %s1153_s15 }
 0x1f0   : > { %p1155_p7 = pnand %p1154_p6, %p1291_p4 }
 0x1f1   : > { %p1160_p12 = por %p1159_p11, %p1158_p10 }
 0x1f2   : > { %p1156_p9 = pneg %p1155_p7 }
 0x1f4   : > { %p1161_p13 = pnand %p1160_p12, %p1156_p9 }
 0x1f6   : > { %1164 = shalt.err (!%p1161_p13)
}
 0x1f7   : > { %s1219_s29 = smov 128   ;;  %s1220_s7 = smov 8  }
 0x1f8   : > { %1079 = dma.vmem_to_hbm [thread:$0]  (%p1291_p4), %s1461_s27, 512, %s1466_s9, %s1468_s21, %s1219_s29, %s1219_s29, %s1220_s7  }
 0x1f9 PF: > { %p1085_p0 = scmp.ge.s32.totalorder %s1215_s23, 2  ;;  %s824_s8 = sand.u32 1, %s1195_s18  }
 0x1fa   : > { %s825_s10 = scalar_lea.sflag [#allocation5], %s824_s8 }
 0x1fb   : > { %p1082_p1 = pnand %p1085_p0, %p1298_p8 }
 0x1fd   : > { %p1083_p2 = pneg %p1082_p1 }
 0x1ff   : > { %1190 = dma.done.wait (%p1083_p2), %s825_s10, 512  }
 0x200   : > { %1192 = vsyncadd (%p1083_p2), %s825_s10, 4294966784  ;;  %s18_s23 = sadd.s32 1, %s1215_s23   ;;  %s1521_s18 = smov %s1199_s19 }
 0x201   : > { %p15_p3 = scmp.ge.s32.totalorder %s18_s23, 4   ;;  %s1522_s19 = smov %s1203_s20 }
 0x202   : > { %s1523_s20 = smov %s1304_s6  ;;  %s1524_s21 = smov %s1211_s22 }
 0x203   : > { %s1525_s22 = smov %s1527_s26  ;;  %17 = sbr.rel (!%p15_p3) target bundleno = 4 (0x4), region = 92 }
 0x208   :  { %830 = vsyncpa [#allocation5], 1 }
 0x209   :  { %832 = vsyncpa [#allocation5 + $0x1], 1 }

</bundles_post_ra>
